<compile_context>
chip_gen: v6e
topology: v6e:2x2x1
jax: 0.10.0
libtpu: 0.0.40
codegen_flags: <defaults>
</compile_context>

<pallas_src>
import jax
import jax.numpy as jnp
from jax.experimental import pallas as pl
from jax.experimental.pallas import tpu as pltpu

OBS_N = 16     # env.observation_space.n for 4x4 FrozenLake
HIDDEN = 64
ACT_N = 4      # env.action_space.n
ACT_PAD = 128  # lane-dense output width (last dim padded to one full vreg lane set)


def net_kernel(x_ref, w1_ref, w2_ref, o_ref):
    # x_ref:  [Bp, 16]    (VMEM, Bp multiple of 8)
    # w1_ref: [16, 64]    (VMEM, pre-transposed: in x out)
    # w2_ref: [64, 128]   (VMEM, pre-transposed and zero-padded: in x out_pad)
    # o_ref:  [Bp, 128]   (lane-dense output; cols >= ACT_N are zeros)
    x = x_ref[...]
    h = jnp.maximum(
        jnp.dot(x, w1_ref[...], preferred_element_type=jnp.float32), 0.0)
    y = jnp.maximum(
        jnp.dot(h, w2_ref[...], preferred_element_type=jnp.float32), 0.0)
    o_ref[...] = y.astype(o_ref.dtype)


def prepare_params(w1, w2):
    """Hoisted out of the hot path: call once per parameter (re)initialization /
    update, NOT per forward.

    w1: [64, 16], w2: [4, 64]  (PyTorch nn.Linear weight layout, out x in)
    Returns (w1_t [16, 64], w2_tp [64, 128]) ready for net_forward.
    """
    w1_t = jnp.asarray(w1, jnp.float32).T                       # [16, 64]
    w2_t = jnp.asarray(w2, jnp.float32).T                       # [64, 4]
    w2_tp = jnp.zeros((HIDDEN, ACT_PAD), jnp.float32)
    w2_tp = w2_tp.at[:, :ACT_N].set(w2_t)                       # zero-pad to 128 lanes
    return w1_t, w2_tp


@jax.jit
def net_forward(x, w1_t, w2_tp):
    """x: [B, 16] f32; w1_t: [16, 64]; w2_tp: [64, 128] (from prepare_params)."""
    B = x.shape[0]
    Bp = max(8, ((B + 7) // 8) * 8)  # round batch up to f32 sublane multiple
    if Bp != B:
        x = jnp.pad(x, ((0, Bp - B), (0, 0)))

    out = pl.pallas_call(
        net_kernel,
        out_shape=jax.ShapeDtypeStruct((Bp, ACT_PAD), jnp.float32),
        # No grid: single invocation, full arrays resident in VMEM.
        in_specs=[
            pl.BlockSpec(memory_space=pltpu.MemorySpace.VMEM),
            pl.BlockSpec(memory_space=pltpu.MemorySpace.VMEM),
            pl.BlockSpec(memory_space=pltpu.MemorySpace.VMEM),
        ],
        out_specs=pl.BlockSpec(memory_space=pltpu.MemorySpace.VMEM),
    )(x, w1_t, w2_tp)

    # Slice back to the real batch and the 4 real actions (padding cols are 0).
    return out[:B, :ACT_N]


def reference_forward(x, w1, w2):
    h = jnp.maximum(x @ w1.T, 0.0)
    return jnp.maximum(h @ w2.T, 0.0)


if __name__ == "__main__":
    key = jax.random.PRNGKey(0)
    k_x, k_w1, k_w2 = jax.random.split(key, 3)

    B = 8
    # Example inputs: arbitrary f32 state encodings (one-hot in the real env).
    x = jax.random.uniform(k_x, (B, OBS_N), dtype=jnp.float32)

    # Deterministic init mirroring nn.init.uniform(a=-0.01, b=0.01).
    w1 = jax.random.uniform(k_w1, (HIDDEN, OBS_N), dtype=jnp.float32,
                            minval=-0.01, maxval=0.01)
    w2 = jax.random.uniform(k_w2, (ACT_N, HIDDEN), dtype=jnp.float32,
                            minval=-0.01, maxval=0.01)

    # One-time parameter prep (outside the per-step hot path).
    w1_t, w2_tp = prepare_params(w1, w2)

    out = net_forward(x, w1_t, w2_tp)
    out = jax.block_until_ready(out)

    ref = reference_forward(x, w1, w2)
    assert out.shape == (B, ACT_N)
    assert jnp.allclose(out, ref, atol=1e-6, rtol=1e-6), "mismatch vs reference"

    print("KERNEL_OK")
</pallas_src>

<mosaic_0001>
module attributes {stable_mosaic.version = 11 : i64} {
  func.func @net_kernel(%arg0: memref<8x16xf32, #tpu.memory_space<vmem>>, %arg1: memref<16x64xf32, #tpu.memory_space<vmem>>, %arg2: memref<64x128xf32, #tpu.memory_space<vmem>>, %arg3: memref<8x128xf32, #tpu.memory_space<vmem>>) attributes {dimension_semantics = [], scalar_prefetch = 0 : i64, scratch_operands = 0 : i64, tpu.core_type = #tpu.core_type<tc>} {
    %c0 = arith.constant 0 : index
    %c0_0 = arith.constant 0 : index
    %0 = vector.load %arg0[%c0, %c0_0] : memref<8x16xf32, #tpu.memory_space<vmem>>, vector<8x16xf32>
    %c0_1 = arith.constant 0 : index
    %c0_2 = arith.constant 0 : index
    %1 = vector.load %arg1[%c0_1, %c0_2] : memref<16x64xf32, #tpu.memory_space<vmem>>, vector<16x64xf32>
    %cst = arith.constant dense<0.000000e+00> : vector<8x64xf32>
    %2 = tpu.matmul %0, %1, %cst {dimension_numbers = #tpu.dot_dimension_numbers<[1], [0], [0], [1], [0, 0, 1, 1], [], []>} : vector<8x16xf32>, vector<16x64xf32>, vector<8x64xf32> -> vector<8x64xf32>
    %cst_3 = arith.constant 0.000000e+00 : f32
    %3 = vector.broadcast %cst_3 : f32 to vector<8x64xf32>
    %4 = arith.maximumf %2, %3 : vector<8x64xf32>
    %c0_4 = arith.constant 0 : index
    %c0_5 = arith.constant 0 : index
    %5 = vector.load %arg2[%c0_4, %c0_5] : memref<64x128xf32, #tpu.memory_space<vmem>>, vector<64x128xf32>
    %cst_6 = arith.constant dense<0.000000e+00> : vector<8x128xf32>
    %6 = tpu.matmul %4, %5, %cst_6 {dimension_numbers = #tpu.dot_dimension_numbers<[1], [0], [0], [1], [0, 0, 1, 1], [], []>} : vector<8x64xf32>, vector<64x128xf32>, vector<8x128xf32> -> vector<8x128xf32>
    %cst_7 = arith.constant 0.000000e+00 : f32
    %7 = vector.broadcast %cst_7 : f32 to vector<8x128xf32>
    %8 = arith.maximumf %6, %7 : vector<8x128xf32>
    %c0_8 = arith.constant 0 : index
    %c0_9 = arith.constant 0 : index
    %9 = vector.load %arg3[%c0_8, %c0_9] : memref<8x128xf32, #tpu.memory_space<vmem>>, vector<8x128xf32>
    tpu.vector_store %arg3[%c0_8, %c0_9], %8 {strides = array<i32>} : memref<8x128xf32, #tpu.memory_space<vmem>>, vector<8x128xf32>,
    return
  }
}

</mosaic_0001>

<bundles_post_ra>
// kernel: net_forward.1
= control target key start
LH: loop header
LB: loop body
LE: loop exit
PB: predicated region body
PF: predicated region fallthrough
CT: control target
= control target key end

     0   :  { %8 = vsyncpa [#allocation3], 0  ;;  %s371_s0 = inlined_call_operand.hbm [shape: f32[8,16], index: 0, kind: input, shape index: {}]   ;;  %s372_s1 = inlined_call_operand.hbm [shape: f32[16,64], index: 1, kind: input, shape index: {}]   ;;  %s373_s2 = inlined_call_operand.hbm [shape: f32[64,128], index: 2, kind: input, shape index: {}]   ;;  %s374_s3 = inlined_call_operand.vmem [shape: f32[8,128], index: 3, kind: output, shape index: {}]  }
   0x1   :  { %9 = vsyncpa [#allocation5], 0  ;;  %s332_s12 = smov [#allocation4]  }
   0x2   :  { %s25_s13 = sshll.u32 %s332_s12, 4  ;;  %s26_s13 = int_to_ptr.vmem [resolvable:$true] %s25_s13 }
   0x3   :  { %s276_s14 = scalar_lea.vmem %s26_s13, 256  ;;  %p281_p1 = scmp.lt.s32.totalorder %s26_s13, %s26_s13 }
   0x4   :  { %p277_p0 = scmp.ne.s32.totalorder %s26_s13, %s276_s14  ;;  %p282_p2 = scmp.lt.s32.totalorder %s276_s14, %s276_s14 }
   0x6   :  { %p283_p3 = por %p282_p2, %p281_p1 }
   0x8   :  { %p284_p4 = pnand %p283_p3, %p277_p0 }
   0xa   :  { %287 = shalt.err (!%p284_p4)
}
   0xb   :  { %s333_s15 = smov 128   ;;  %s334_s16 = smov 8  }
   0xc   :  { %31 = dma.hbm_to_vmem [thread:$0]  %s372_s1, 256, %s26_s13, [#allocation5], %s333_s15, %s333_s15, %s334_s16  }
   0xd   :  { %s335_s19 = smov [#allocation2]   ;;  %s336_s21 = smov [#allocation6]  }
   0xe   :  { %s16_s20 = sshll.u32 %s335_s19, 4  ;;  %s37_s22 = sshll.u32 %s336_s21, 4  ;;  %s17_s20 = int_to_ptr.vmem [resolvable:$true] %s16_s20  ;;  %s38_s22 = int_to_ptr.vmem [resolvable:$true] %s37_s22 }
   0xf   :  { %s296_s23 = scalar_lea.vmem %s17_s20, 128  ;;  %p301_p6 = scmp.lt.s32.totalorder %s17_s20, %s17_s20 }
  0x10   :  { %p297_p5 = scmp.ne.s32.totalorder %s17_s20, %s296_s23  ;;  %p302_p7 = scmp.lt.s32.totalorder %s296_s23, %s296_s23 }
  0x12   :  { %p303_p8 = por %p302_p7, %p301_p6 }
  0x14   :  { %p304_p9 = pnand %p303_p8, %p297_p5 }
  0x16   :  { %307 = shalt.err (!%p304_p9)
}
  0x17   :  { %19 = dma.hbm_to_vmem [thread:$0]  %s371_s0, 128, %s17_s20, [#allocation3]  }
  0x18   :  { %s316_s26 = scalar_lea.vmem %s38_s22, 1024  ;;  %p321_p11 = scmp.lt.s32.totalorder %s38_s22, %s38_s22 }
  0x19   :  { %p317_p10 = scmp.ne.s32.totalorder %s38_s22, %s316_s26  ;;  %p322_p12 = scmp.lt.s32.totalorder %s316_s26, %s316_s26 }
  0x1b   :  { %p323_p13 = por %p322_p12, %p321_p11 }
  0x1d   :  { %p324_p0 = pnand %p323_p13, %p317_p10 }
  0x1f   :  { %327 = shalt.err (!%p324_p0)
}
  0x20   :  { %43 = dma.hbm_to_vmem [thread:$0]  %s373_s2, 1024, %s38_s22, [#allocation5], %s333_s15, %s333_s15, %s334_s16  }
  0x21   :  { %328 = dma.done.wait [#allocation3], 128  }
  0x22   :  { %329 = vsyncadd [#allocation3], 4294967168 }
  0x23   :  { %330 = dma.done.wait [#allocation5], 1280  }
  0x24   :  { %331 = vsyncadd [#allocation5], 4294966016  ;;  %v337_v0 = vmov 0.0   ;;  %vm338_vm0 = vmmov 0   ;;  %v55_v1 = vld [vmem:[#allocation4 + $0x8] sm:$0xff]  ;;  %v54_v2 = vld [vmem:[#allocation4] sm:$0xff] }
  0x25   :  { %235 = vmatprep.subr.mxu0 %v337_v0  ;;  %239 = vmatprep.mubr.msk.f32.mxu0 %vm338_vm0, %v337_v0  ;;  %v53_v3 = vld [vmem:[#allocation2] sm:$0xff]  ;;  %vm56_vm1 = vcmask 130048   ;;  %v138_v4 = vld [vmem:[#allocation6 + $0x38] sm:$0xff]  ;;  %v137_v5 = vld [vmem:[#allocation6 + $0x30] sm:$0xff]  ;;  %vm139_vm2 = vcmask 523264  }
  0x26   :  { %242 = vmatprep.subr.mxu1 %v337_v0  ;;  %258 = vmatprep.mubr.msk.f32.mxu1 %vm338_vm0, %v337_v0  ;;  %v136_v6 = vld [vmem:[#allocation6 + $0x28] sm:$0xff]  ;;  %v135_v7 = vld [vmem:[#allocation6 + $0x20] sm:$0xff]  ;;  %v134_v8 = vld [vmem:[#allocation6 + $0x18] sm:$0xff] }
  0x27   :  { %236 = vmatpush3.msra.mxu0 %v55_v1  ;;  %243 = vmatpush3.msra.mxu1 %v138_v4  ;;  %v133_v9 = vld [vmem:[#allocation6 + $0x10] sm:$0xff]  ;;  %v132_v10 = vld [vmem:[#allocation6 + $0x8] sm:$0xff]  ;;  %v131_v11 = vld [vmem:[#allocation6] sm:$0xff] }
  0x28   :  { %237 = vmatprep.subr.mxu0 %v337_v0  ;;  %244 = vmatprep.subr.mxu1 %v337_v0 }
  0x29   :  { %238 = vmatpush3.msra.mxu0 %v54_v2  ;;  %245 = vmatpush3.msra.mxu1 %v137_v5 }
  0x2a   :  { %240 = vmatmul.mubr.msk.f32.vlgmr.msra.gmra.mxu0 %vm56_vm1, %v53_v3  ;;  %246 = vmatprep.subr.mxu1 %v337_v0 }
  0x2b   :  { %247 = vmatpush3.msra.mxu1 %v136_v6 }
  0x2c   :  { %248 = vmatprep.subr.mxu1 %v337_v0 }
  0x2d   :  { %249 = vmatpush3.msra.mxu1 %v135_v7 }
  0x2e   :  { %250 = vmatprep.subr.mxu1 %v337_v0 }
  0x2f   :  { %251 = vmatpush3.msra.mxu1 %v134_v8 }
  0x30   :  { %252 = vmatprep.subr.mxu1 %v337_v0 }
  0x31   :  { %253 = vmatpush3.msra.mxu1 %v133_v9 }
  0x32   :  { %254 = vmatprep.subr.mxu1 %v337_v0 }
  0x33   :  { %255 = vmatpush3.msra.mxu1 %v132_v10 }
  0x34   :  { %256 = vmatprep.subr.mxu1 %v337_v0 }
  0x35   :  { %257 = vmatpush3.msra.mxu1 %v131_v11 }
  0xea   :  { %v126_v12 = vpop.f32.mrf.mxu0 }
  0xeb   :  { %v130_v13 = vmax.f32 %v126_v12, 0.0 }
  0xec   :  { %v241_v14 = vpop.f32.mrf.mxu0 }
  0xed   :  { %259 = vmatmul.mubr.msk.f32.vlgmr.msra.gmra.mxu1 %vm139_vm2, %v130_v13 }
 0x1ad   :  { %v209_v15 = vpop.f32.mrf.mxu1 }
 0x1ae   :  { %v213_v16 = vmax.f32 %v209_v15, 0.0 }
 0x1af   :  { %v260_v17 = vpop.f32.mrf.mxu1 }
 0x1b0   :  { %214 = vst [vmem:[%s374_s3] sm:$0xff] %v213_v16 }
 0x1b1   :  { %219 = vsyncpa [#allocation3], 1 }
 0x1b2   :  { %220 = vsyncpa [#allocation5], 1 }

</bundles_post_ra>
